<compile_context>
chip_gen: v5e
topology: v5e:2x2
jax: 0.10.0
libtpu: 0.0.40
codegen_flags: <defaults>
</compile_context>

<pallas_src>
import jax
import jax.numpy as jnp
from jax import lax
from jax.experimental import pallas as pl
from jax.experimental.pallas import tpu as pltpu


def _cosine_kernel(x_ref, out_ref):
    # x_ref: (N, D) f32 in VMEM ; out_ref: (N, 1) f32 column of cosines vs row 0.
    x = x_ref[...].astype(jnp.float32)                       # (N, D)

    # Per-row inverse L2 norm: rsqrt(max(ss, 1e-24)) == 1 / max(||x||, 1e-12),
    # i.e. exactly F.normalize's eps clamp.  One lane reduce (XLU) + one EUP rsqrt.
    ss = jnp.sum(x * x, axis=1, keepdims=True)               # (N, 1)
    inv = lax.rsqrt(jnp.maximum(ss, 1e-24))                  # (N, 1)

    # Raw dots against row 0: VPU multiply (row-0 sublane broadcast) + XLU lane
    # reduce.  No MXU involvement -> no systolic fill / result-FIFO drain latency.
    dots = jnp.sum(x * x[0:1, :], axis=1, keepdims=True)     # (N, 1) = x_i . x_0

    # cos_i = (x0 . x_i) / (max(||x0||,1e-12) * max(||x_i||,1e-12))
    # (== cosine_similarity of the normalized rows; normalized rows never built).
    out_ref[...] = dots * inv * inv[0:1, :]                  # (N, 1)


def cosine_layer(ave_result):
    """Pallas implementation of CosineLayer.forward. Returns shape (1, N-1)."""
    N, D = ave_result.shape

    cost = pl.CostEstimate(
        flops=4 * N * D,            # ss + dots (+ tiny scaling)
        transcendentals=N,          # one rsqrt per row
        bytes_accessed=4 * (N * D + N),
    )

    out_col = pl.pallas_call(
        _cosine_kernel,
        out_shape=jax.ShapeDtypeStruct((N, 1), jnp.float32),
        # Gridless whole-array call: full arrays resident in VMEM, no pipeline.
        in_specs=[pl.BlockSpec(memory_space=pltpu.MemorySpace.VMEM)],
        out_specs=pl.BlockSpec(memory_space=pltpu.MemorySpace.VMEM),
        cost_estimate=cost,
    )(ave_result)

    # Drop the row-0 self-similarity and present the (1, N-1) view outside the
    # kernel (static XLA slice + reshape).
    return out_col[1:, 0].reshape(1, N - 1)


def _reference(ave_result):
    # Pure-JAX reference mirroring the PyTorch forward exactly.
    x = ave_result.astype(jnp.float32)
    xn = x / jnp.maximum(jnp.linalg.norm(x, axis=1, keepdims=True), 1e-12)
    row0 = xn[0:1]
    dots = jnp.sum(row0 * xn, axis=1)
    denom = jnp.maximum(
        jnp.linalg.norm(row0, axis=1) * jnp.linalg.norm(xn, axis=1), 1e-8
    )
    cos = dots / denom
    return cos[1:].reshape(1, -1)


if __name__ == "__main__":
    # CosineLayer(num_positive=3, num_negative=4) -> N = 1 + 3 + 4 = 8 rows
    num_positive, num_negative = 3, 4
    N = 1 + num_positive + num_negative
    D = 32

    key = jax.random.PRNGKey(0)
    ave_result = jax.random.normal(key, (N, D), dtype=jnp.float32)

    out = cosine_layer(ave_result)
    out = jax.block_until_ready(out)

    ref = _reference(ave_result)
    assert out.shape == (1, N - 1), out.shape
    assert jnp.allclose(out, ref, atol=1e-5, rtol=1e-5), (out, ref)

    print("KERNEL_OK")
</pallas_src>

<mosaic_0001>
module attributes {stable_mosaic.version = 11 : i64} {
  func.func @_cosine_kernel(%arg0: memref<8x32xf32, #tpu.memory_space<vmem>>, %arg1: memref<8x1xf32, #tpu.memory_space<vmem>>) attributes {dimension_semantics = [], scalar_prefetch = 0 : i64, scratch_operands = 0 : i64, tpu.core_type = #tpu.core_type<tc>} {
    %c0 = arith.constant 0 : index
    %c0_0 = arith.constant 0 : index
    %0 = vector.load %arg0[%c0, %c0_0] : memref<8x32xf32, #tpu.memory_space<vmem>>, vector<8x32xf32>
    %1 = arith.mulf %0, %0 : vector<8x32xf32>
    %cst = arith.constant dense<0.000000e+00> : vector<8xf32>
    %2 = vector.multi_reduction <add>, %1, %cst [1] : vector<8x32xf32> to vector<8xf32>
    %3 = vector.shape_cast %2 : vector<8xf32> to vector<8x1xf32>
    %cst_1 = arith.constant 1.000000e-24 : f32
    %4 = vector.broadcast %cst_1 : f32 to vector<8x1xf32>
    %5 = arith.maximumf %3, %4 : vector<8x1xf32>
    %6 = math.rsqrt %5 : vector<8x1xf32>
    %7 = vector.extract_strided_slice %0 {offsets = [0, 0], sizes = [1, 32], strides = [1, 1]} : vector<8x32xf32> to vector<1x32xf32>
    %8 = vector.broadcast %7 : vector<1x32xf32> to vector<8x32xf32>
    %9 = arith.mulf %0, %8 : vector<8x32xf32>
    %cst_2 = arith.constant dense<0.000000e+00> : vector<8xf32>
    %10 = vector.multi_reduction <add>, %9, %cst_2 [1] : vector<8x32xf32> to vector<8xf32>
    %11 = vector.shape_cast %10 : vector<8xf32> to vector<8x1xf32>
    %12 = arith.mulf %11, %6 : vector<8x1xf32>
    %13 = vector.extract_strided_slice %6 {offsets = [0, 0], sizes = [1, 1], strides = [1, 1]} : vector<8x1xf32> to vector<1x1xf32>
    %14 = vector.broadcast %13 : vector<1x1xf32> to vector<8x1xf32>
    %15 = arith.mulf %12, %14 : vector<8x1xf32>
    %c0_3 = arith.constant 0 : index
    %c0_4 = arith.constant 0 : index
    %16 = vector.load %arg1[%c0_3, %c0_4] : memref<8x1xf32, #tpu.memory_space<vmem>>, vector<8x1xf32>
    tpu.vector_store %arg1[%c0_3, %c0_4], %15 {strides = array<i32>} : memref<8x1xf32, #tpu.memory_space<vmem>>, vector<8x1xf32>,
    return
  }
}

</mosaic_0001>

<bundles_post_ra>
// kernel: tpu_custom_call.1
= control target key start
LH: loop header
LB: loop body
LE: loop exit
PB: predicated region body
PF: predicated region fallthrough
CT: control target
= control target key end

     0   :  { %6 = vsyncpa [#allocation3], 0  ;;  %s83_s9 = smov [#allocation2]   ;;  %s100_s0 = inlined_call_operand.hbm [shape: f32[8,32], index: 0, kind: input, shape index: {}]   ;;  %s101_s1 = inlined_call_operand.vmem [shape: f32[8,1], index: 1, kind: output, shape index: {}]  }
   0x1   :  { %s12_s8 = sshll.u32 %s100_s0, 4  ;;  %s14_s10 = sshll.u32 %s83_s9, 4  ;;  %s13_s8 = int_to_ptr.hbm [resolvable:$true] %s12_s8  ;;  %s15_s10 = int_to_ptr.vmem [resolvable:$true] %s14_s10 }
   0x2   :  { %17 = dma.hbm_to_vmem [thread:$0]  %s13_s8, 128, %s15_s10, [#allocation3]  }
   0x3   :  { %81 = dma.done.wait [#allocation3], 128  }
   0x4   :  { %82 = vsyncadd [#allocation3], 4294967168  ;;  %v22_v0 = vld [vmem:[#allocation2] sm:$0xff]  ;;  %vm24_vm0 = vcmask 261120   ;;  %vm47_vm4 = vcmask 7168  }
   0x5   :  { %v23_v1 = vmul.f32 %v22_v0, %v22_v0  ;;  %v39_v2 = vperm.slane %v22_v0, 0 }
   0x7   :  { %v25_v3 = vsel %vm24_vm0, %v23_v1, 0.0  ;;  %v40_v4 = vmul.f32 %v39_v2, %v22_v0 }
   0x8   :  { %26 = vadd.xlane.f32.xlu0 %v25_v3 }
   0x9   :  { %v41_v5 = vsel %vm24_vm0, %v40_v4, 0.0 }
  0x10   :  { %42 = vadd.xlane.f32.xlu0 %v41_v5 }
  0x7b   :  { %v27_v6 = vpop.xlane.xlu0 %26 }
  0x7c   :  { %v28_v7 = vmax.f32 %v27_v6, 1e-24 }
  0x7e   :  { %55 = vrsqrt.f32 %v28_v7  ;;  %vm35_vm2 = vweird.f32 %v28_v7 }
  0x83   :  { %v43_v14 = vpop.xlane.xlu0 %42 }
  0x84   :  { %v56_v8 = vpop.eup %55 }
  0x85   :  { %v30_v9 = vmul.f32 %v56_v8, %v28_v7  ;;  %vm36_vm1 = vweird.f32 %v56_v8 }
  0x86   :  { %vm37_vm3 = vmor %vm35_vm2, %vm36_vm1 }
  0x87   :  { %v31_v10 = vmul.f32 %v56_v8, %v30_v9 }
  0x89   :  { %v32_v11 = vmul.f32 0.5, %v31_v10 }
  0x8b   :  { %v33_v12 = vsub.f32 1.5, %v32_v11 }
  0x8d   :  { %v34_v13 = vmul.f32 %v56_v8, %v33_v12 }
  0x8f   :  { %v38_v15 = vsel %vm37_vm3, %v56_v8, %v34_v13 }
  0x90   :  { %v45_v16 = vperm.slane %v38_v15, 0  ;;  %v44_v17 = vmul.f32 %v43_v14, %v38_v15 }
  0x92   :  { %v46_v18 = vmul.f32 %v45_v16, %v44_v17 }
  0x94   :  { %48 = vst.msk [vmem:[%s101_s1] sm:$0xff] %vm47_vm4, %v46_v18 }
  0x95   :  { %53 = vsyncpa [#allocation3], 1 }

</bundles_post_ra>
